<compile_context>
chip_gen: v7x
topology: tpu7x:2x2x1
jax: 0.10.0
libtpu: 0.0.40
codegen_flags: <defaults>
</compile_context>

<pallas_src>
import jax
import jax.numpy as jnp
from jax.experimental import pallas as pl
from jax.experimental.pallas import tpu as pltpu


def _conv_matmul_kernel(p_ref, w_ref, b_ref, o_ref):
    # p_ref: (1, K, rows)   im2col patches (transposed), one block
    # w_ref: (Cout, K)      flattened conv weights
    # b_ref: (Cout, 1)      bias column
    # o_ref: (1, Cout, rows) conv output block (channels-major, rows = OH*OW[*N])
    acc = jnp.dot(w_ref[...], p_ref[0], preferred_element_type=jnp.float32)
    o_ref[0] = (acc + b_ref[...]).astype(o_ref.dtype)


def conv2d_permute_copy(x_nchw, weight, bias, new_dims, *, stride=2, padding=0,
                        split_batch=None, mxu_dtype=None):
    """Conv2dPermuteCopyModule.forward: Conv2d(stride, padding, bias=True) -> permute.

    Only dilation=1 / groups=1 (the module's defaults) are supported.
    """
    N, Cin, H, W = x_nchw.shape
    Cout, Cin_w, KH, KW = weight.shape
    assert Cin == Cin_w, (Cin, Cin_w)
    if padding:
        x_nchw = jnp.pad(
            x_nchw, ((0, 0), (0, 0), (padding, padding), (padding, padding)))
        H += 2 * padding
        W += 2 * padding
    OH = (H - KH) // stride + 1
    OW = (W - KW) // stride + 1
    assert OH > 0 and OW > 0, (OH, OW)
    R = OH * OW
    K = KH * KW * Cin

    # --- wrapper-side im2col (single cheap XLA pass, ~N*R*K elements) ---------
    x_nhwc = jnp.transpose(x_nchw, (0, 2, 3, 1))                  # (N, H, W, Cin)
    taps = []
    for i in range(KH):
        for j in range(KW):
            taps.append(x_nhwc[:,
                               i:i + stride * (OH - 1) + 1:stride,
                               j:j + stride * (OW - 1) + 1:stride, :])
    patches = jnp.stack(taps, axis=3)                              # (N, OH, OW, KH*KW, Cin)
    patches = patches.reshape(N, R, K)                             # row r = (oh, ow)

    # weight (Cout, Cin, KH, KW) -> (Cout, K), K ordered (kh, kw, cin) to match patches
    w_mat = jnp.transpose(weight, (0, 2, 3, 1)).reshape(Cout, K)
    b_col = bias.reshape(Cout, 1).astype(jnp.float32)

    if mxu_dtype is not None:                                      # e.g. jnp.bfloat16 on v6e/v7x
        patches = patches.astype(mxu_dtype)
        w_mat = w_mat.astype(mxu_dtype)

    if split_batch is None:
        # v7x has 2 TensorCores/chip -> shard the batch grid across them;
        # v5e/v6e are single-TC, so one kernel step over the whole batch is cheaper.
        try:
            split_batch = "v7" in jax.devices()[0].device_kind.lower()
        except Exception:  # pragma: no cover - defensive
            split_batch = False

    if split_batch:
        G, rows = N, R
        p_in = jnp.transpose(patches, (0, 2, 1))                   # (N, K, R)
    else:
        G, rows = 1, N * R
        p_in = jnp.transpose(patches, (2, 0, 1)).reshape(1, K, N * R)

    flops = 2 * N * R * K * Cout
    bytes_accessed = 4 * (p_in.size + w_mat.size + b_col.size + G * Cout * rows)

    out = pl.pallas_call(
        _conv_matmul_kernel,
        out_shape=jax.ShapeDtypeStruct((G, Cout, rows), x_nchw.dtype),
        grid=(G,),
        in_specs=[
            pl.BlockSpec((1, K, rows), lambda n: (n, 0, 0)),
            pl.BlockSpec((Cout, K), lambda n: (0, 0)),      # VMEM-resident across steps
            pl.BlockSpec((Cout, 1), lambda n: (0, 0)),
        ],
        out_specs=pl.BlockSpec((1, Cout, rows), lambda n: (n, 0, 0)),
        compiler_params=pltpu.CompilerParams(
            dimension_semantics=("parallel",)),
        cost_estimate=pl.CostEstimate(
            flops=flops, transcendentals=0, bytes_accessed=bytes_accessed),
    )(p_in, w_mat, b_col)

    # Reassemble NCHW (free reshapes on a tiny array), then apply torch.permute.
    if split_batch:
        out_nchw = out.reshape(N, Cout, OH, OW)
    else:
        out_nchw = jnp.transpose(out.reshape(Cout, N, OH, OW), (1, 0, 2, 3))

    return jnp.transpose(out_nchw, new_dims)


if __name__ == "__main__":
    key = jax.random.PRNGKey(0)
    kx, kw, kb = jax.random.split(key, 3)

    # Conv2dModule defaults: in_channels=4, out_channels=8, kernel=3,
    # stride=2, padding=0, dilation=1, bias=True.
    N, Cin, H, W = 2, 4, 16, 16
    Cout, KH, KW = 8, 3, 3
    stride, padding = 2, 0

    x = jax.random.normal(kx, (N, Cin, H, W), dtype=jnp.float32)
    fan_in = Cin * KH * KW
    bound = 1.0 / (fan_in ** 0.5)
    weight = jax.random.uniform(kw, (Cout, Cin, KH, KW), jnp.float32, -bound, bound)
    bias = jax.random.uniform(kb, (Cout,), jnp.float32, -bound, bound)

    def reference(new_dims):
        ref = jax.lax.conv_general_dilated(
            x, weight, window_strides=(stride, stride), padding="VALID",
            dimension_numbers=("NCHW", "OIHW", "NCHW"))
        ref = ref + bias.reshape(1, Cout, 1, 1)
        return jnp.transpose(ref, new_dims)

    # Exercise both grid layouts (collapsed for v5e/v6e, per-image for v7x) and
    # both an identity-like and a non-trivial permutation.
    for new_dims in [(0, 2, 3, 1), (0, 3, 1, 2)]:
        for split in (False, True):
            out = conv2d_permute_copy(x, weight, bias, new_dims,
                                      stride=stride, padding=padding,
                                      split_batch=split)
            out = jax.block_until_ready(out)
            ref = reference(new_dims)
            assert out.shape == ref.shape, (out.shape, ref.shape)
            assert jnp.allclose(out, ref, atol=1e-4, rtol=1e-4), (
                new_dims, split, float(jnp.max(jnp.abs(out - ref))))

    print("KERNEL_OK")
</pallas_src>

<mosaic_0001>
module attributes {stable_mosaic.version = 11 : i64} {
  func.func @_conv_matmul_kernel(%arg0: i32, %arg1: memref<1x36x98xf32, #tpu.memory_space<vmem>>, %arg2: memref<8x36xf32, #tpu.memory_space<vmem>>, %arg3: memref<8x1xf32, #tpu.memory_space<vmem>>, %arg4: memref<1x8x98xf32, #tpu.memory_space<vmem>>) attributes {dimension_semantics = [#tpu.dimension_semantics<parallel>], iteration_bounds = array<i64: 1>, scalar_prefetch = 0 : i64, scratch_operands = 0 : i64, tpu.core_type = #tpu.core_type<tc>, window_params = [{transform_indices = @transform_0, window_bounds = array<i64: 1, 36, 98>}, {pipeline_mode = #tpu.pipeline_mode<synchronous>, transform_indices = @transform_1, window_bounds = array<i64: 8, 36>}, {pipeline_mode = #tpu.pipeline_mode<synchronous>, transform_indices = @transform_2, window_bounds = array<i64: 8, 1>}, {transform_indices = @transform_3, window_bounds = array<i64: 1, 8, 98>}]} {
    %c0 = arith.constant 0 : index
    %c0_0 = arith.constant 0 : index
    %0 = vector.load %arg2[%c0, %c0_0] : memref<8x36xf32, #tpu.memory_space<vmem>>, vector<8x36xf32>
    %c0_1 = arith.constant 0 : index
    %c0_2 = arith.constant 0 : index
    %c0_3 = arith.constant 0 : index
    %1 = vector.load %arg1[%c0_1, %c0_2, %c0_3] : memref<1x36x98xf32, #tpu.memory_space<vmem>>, vector<1x36x98xf32>
    %2 = vector.shape_cast %1 : vector<1x36x98xf32> to vector<36x98xf32>
    %cst = arith.constant dense<0.000000e+00> : vector<8x98xf32>
    %3 = tpu.matmul %0, %2, %cst {dimension_numbers = #tpu.dot_dimension_numbers<[1], [0], [0], [1], [0, 0, 1, 1], [], []>} : vector<8x36xf32>, vector<36x98xf32>, vector<8x98xf32> -> vector<8x98xf32>
    %c0_4 = arith.constant 0 : index
    %c0_5 = arith.constant 0 : index
    %4 = vector.load %arg3[%c0_4, %c0_5] : memref<8x1xf32, #tpu.memory_space<vmem>>, vector<8x1xf32>
    %5 = vector.broadcast %4 : vector<8x1xf32> to vector<8x98xf32>
    %6 = arith.addf %3, %5 : vector<8x98xf32>
    %c0_6 = arith.constant 0 : index
    %c0_7 = arith.constant 0 : index
    %c0_8 = arith.constant 0 : index
    %7 = vector.load %arg4[%c0_6, %c0_7, %c0_8] : memref<1x8x98xf32, #tpu.memory_space<vmem>>, vector<1x8x98xf32>
    %8 = vector.shape_cast %7 : vector<1x8x98xf32> to vector<8x98xf32>
    %9 = vector.shape_cast %6 : vector<8x98xf32> to vector<1x8x98xf32>
    tpu.vector_store %arg4[%c0_6, %c0_7, %c0_8], %9 {strides = array<i32>} : memref<1x8x98xf32, #tpu.memory_space<vmem>>, vector<1x8x98xf32>,
    return
  }
  func.func @transform_0(%arg0: i32) -> (i32, i32, i32) {
    %c0_i32 = arith.constant 0 : i32
    %c0_i32_0 = arith.constant 0 : i32
    %c0_i32_1 = arith.constant 0 : i32
    return %arg0, %c0_i32, %c0_i32_0 : i32, i32, i32
  }
  func.func @transform_1(%arg0: i32) -> (i32, i32) {
    %c0_i32 = arith.constant 0 : i32
    %c0_i32_0 = arith.constant 0 : i32
    %c0_i32_1 = arith.constant 0 : i32
    return %c0_i32, %c0_i32_0 : i32, i32
  }
  func.func @transform_2(%arg0: i32) -> (i32, i32) {
    %c0_i32 = arith.constant 0 : i32
    %c0_i32_0 = arith.constant 0 : i32
    %c0_i32_1 = arith.constant 0 : i32
    return %c0_i32, %c0_i32_0 : i32, i32
  }
  func.func @transform_3(%arg0: i32) -> (i32, i32, i32) {
    %c0_i32 = arith.constant 0 : i32
    %c0_i32_0 = arith.constant 0 : i32
    %c0_i32_1 = arith.constant 0 : i32
    return %arg0, %c0_i32, %c0_i32_0 : i32, i32, i32
  }
}

</mosaic_0001>

<bundles_post_ra>
// kernel: tpu_custom_call.1
= control target key start
LH: loop header
LB: loop body
LE: loop exit
PB: predicated region body
PF: predicated region fallthrough
CT: control target
= control target key end

     0   :  { %v178_v3 = vmov 0.0|0.0   ;;  %vm179_vm0 = vmmov 0   ;;  %v180_v6 = vmov 0.0   ;;  %s236_s0 = inlined_call_operand.vmem [shape: f32[1,36,98], index: 0, kind: input, shape index: {}]   ;;  %s237_s1 = inlined_call_operand.vmem [shape: f32[8,36], index: 1, kind: input, shape index: {}]   ;;  %s238_s2 = inlined_call_operand.vmem [shape: f32[8,1], index: 2, kind: input, shape index: {}]   ;;  %s239_s3 = inlined_call_operand.hbm [shape: f32[1,8,98], index: 3, kind: output, shape index: {}]  }
   0x1   :  { %v16_v0 = vld [vmem:[%s236_s0] sm:$0xff]  ;;  %v17_v1 = vld [vmem:[%s236_s0 + $0x8] sm:$0xff]  ;;  %v18_v2 = vld [vmem:[%s236_s0 + $0x10] sm:$0xff]  ;;  %142 = vmatprep.subr.bf16.mxu0 %v178_v3  ;;  %139 = vmatprep.mubr.msk.f32.mxu0 %vm179_vm0, %v180_v6 }
   0x2   :  { %v143_v4 = vpack.c.bf16 %v17_v1, %v16_v0  ;;  %v19_v5 = vld [vmem:[%s236_s0 + $0x18] sm:$0xff]  ;;  %v21_v7 = vld [vmem:[%s238_s2] sm:$0xff] }
   0x3   :  { %8 = vsyncpa [#allocation3], 0  ;;  %v146_v8 = vpack.c.bf16 %v19_v5, %v18_v2  ;;  %v181_v9 = vmov 0   ;;  %v20_v10 = vld [vmem:[%s236_s0 + $0x20] sm:$0xf]  ;;  %vm31_vm1 = vcmask 1043456  }
   0x4   :  { %144 = vmatpush3.bf16.msra.mxu0 %v143_v4  ;;  %153 = vset.pattern.permute.xlu0 %v181_v9  ;;  %v15_v11 = vld [vmem:[%s237_s1] sm:$0xff]  ;;  %vm27_vm2 = vcmask 293888   ;;  %s182_s2 = smov [#allocation2]   ;;  %vm105_vm3 = vcmask 801792  }
   0x5   :  { %145 = vmatprep.subr.bf16.mxu0 %v178_v3  ;;  %24 = vperm.xlu0 %153, %v21_v7   ;;  %s113_s26 = sshll.u32 %s182_s2, 4  ;;  %s114_s26 = int_to_ptr.vmem [resolvable:$true] %s113_s26 }
   0x6   :  { %s154_s27 = scalar_lea.vmem %s114_s26, 128  ;;  %p159_p1 = scmp.lt.s32.totalorder %s114_s26, %s114_s26 }
   0x7   :  { %p155_p0 = scmp.ne.s32.totalorder %s114_s26, %s154_s27  ;;  %p160_p2 = scmp.lt.s32.totalorder %s154_s27, %s154_s27 }
   0x8   :  { %147 = vmatpush3.bf16.msra.mxu0 %v146_v8 }
   0x9   :  { %137 = vmatprep.subr.mxu0 %v180_v6  ;;  %p161_p3 = por %p160_p2, %p159_p1 }
   0xb   :  { %p162_p4 = pnand %p161_p3, %p155_p0 }
   0xc   :  { %138 = vmatpush3.msk.msra.mxu0 %vm31_vm1, %v20_v10 }
   0xd   :  { %140 = vmatmul.mubr.msk.f32.vlgmr.msra.gmra.mrb[0].mxu0 %vm27_vm2, %v15_v11 }
  0x84   :  { %v25_v12 = vpop.permute.xlu0 %24 }
  0xe0   :  { %v101_v13 = vpop.f32.mrb[0].mxu0 }
  0xe1   :  { %v102_v14 = vadd.f32 %v101_v13, %v25_v12  ;;  %v141_v15 = vpop.f32.mrb[1].mxu0 }
  0xe3   :  { %106 = vst.msk [vmem:[#allocation2] sm:$0xff] %vm105_vm3, %v102_v14 }
  0xe4   :  { %165 = shalt.err (!%p162_p4)
}
  0xe5   :  { %s166_s28 = scalar_lea.hbm %s239_s3, 128 }
  0xe6   :  { %p167_p5 = scmp.ne.s32.totalorder %s239_s3, %s166_s28  ;;  %p170_p6 = scmp.lt.u32.totalorder %s166_s28, %s239_s3 }
  0xe8   :  { %p172_p7 = pnand %p170_p6, %p167_p5 }
  0xea   :  { %175 = shalt.err (!%p172_p7)
}
  0xeb   :  { %116 = dma.vmem_to_hbm [thread:$0]  %s114_s26, 128, %s239_s3, [#allocation3]  }
  0xec   :  { %176 = dma.done.wait [#allocation3], 128  }
  0xed   :  { %177 = vsyncadd [#allocation3], 4294967168 }
  0xee   :  { %120 = vsyncpa [#allocation3], 1 }

</bundles_post_ra>
